<compile_context>
chip_gen: v7x
topology: tpu7x:2x2x1
jax: 0.10.0
libtpu: 0.0.40
codegen_flags: <defaults>
</compile_context>

<pallas_src>
import functools

import jax
import jax.numpy as jnp
from jax.experimental import pallas as pl
from jax.experimental.pallas import tpu as pltpu

# ~2 MiB of f32 per input block (4096 rows x 128 lanes). Review: fine for all
# generations; on v7x larger blocks would also fit but this already hides the
# per-step overhead while staying well under the 32 MiB default scoped VMEM.
_BLOCK_ROWS_MAX = 4096


def size_loss_kernel(size_ids_ref, tok_ref, attn_ref, out_ref,
                     scount_ref, asum_ref, ssum_ref,
                     *, seq_len, block_rows, num_ids):
    i = pl.program_id(0)

    @pl.when(i == 0)
    def _():
        scount_ref[...] = jnp.zeros_like(scount_ref)
        asum_ref[...] = jnp.zeros_like(asum_ref)
        ssum_ref[...] = jnp.zeros_like(ssum_ref)

    tok = tok_ref[...]                            # (block_rows, 128) int32
    attn = attn_ref[...].astype(jnp.float32)      # cast in-kernel (bf16 producers OK)

    # Positional validity mask: flat position of every element in the original
    # 1-D sequence. Handles both the pad-to-1024 tail and any out-of-bounds
    # garbage in a partial edge block; no value sentinels needed.
    row = jax.lax.broadcasted_iota(jnp.int32, tok.shape, 0)
    lane = jax.lax.broadcasted_iota(jnp.int32, tok.shape, 1)
    pos = (i * block_rows + row) * 128 + lane
    valid = pos < seq_len

    # Membership mask from the SMEM-prefetched size-related token ids (VPU
    # compares; num_ids is tiny so the unrolled chain is free in a mem-bound
    # kernel).  TODO(synk): switch to a bitset/interval test if the id set grows.
    is_size = tok == size_ids_ref[0]
    for k in range(1, num_ids):
        is_size = is_size | (tok == size_ids_ref[k])
    is_size = is_size & valid
    ms = is_size.astype(jnp.float32)
    attn = jnp.where(valid, attn, 0.0)

    # Three running reductions cover everything (mask_other removed algebraically).
    scount_ref[...] += jnp.sum(ms, keepdims=True)         # # of size-related tokens
    asum_ref[...] += jnp.sum(attn, keepdims=True)         # sum of all weights
    ssum_ref[...] += jnp.sum(ms * attn, keepdims=True)    # sum of size-related weights

    @pl.when(i == pl.num_programs(0) - 1)
    def _():
        scount = scount_ref[...]
        asum = asum_ref[...]
        ssum = ssum_ref[...]
        ocount = jnp.float32(seq_len) - scount             # true length, not padded
        # Exact divisions: two scalars, cost is invisible next to the DMA.
        size_loss = 1.0 - ssum / jnp.maximum(scount, 1.0)   # mean(1 - size weights)
        other_loss = (asum - ssum) / jnp.maximum(ocount, 1.0)  # mean(other weights)
        out_ref[...] = jnp.where(scount > 0.0, size_loss + other_loss,
                                 jnp.zeros_like(scount))


def _size_loss_pallas(attention, tokens, size_ids):
    S = attention.shape[0]
    assert tokens.shape[0] == S, "attention / src_tokens length mismatch"

    # Lane- and sublane-dense layout: pad S up to a multiple of 1024 (only when
    # needed; <= 1023 extra elements) and view as (rows, 128), rows % 8 == 0.
    padded = -(-S // 1024) * 1024
    pad = padded - S
    if pad:
        attention = jnp.pad(attention, (0, pad))
        tokens = jnp.pad(tokens, (0, pad))
    rows = padded // 128
    attn2d = attention.reshape(rows, 128)    # free reshape, no copy
    tok2d = tokens.reshape(rows, 128)

    block_rows = min(rows, _BLOCK_ROWS_MAX)
    grid = (pl.cdiv(rows, block_rows),)

    kernel = functools.partial(size_loss_kernel, seq_len=S,
                               block_rows=block_rows,
                               num_ids=size_ids.shape[0])
    out = pl.pallas_call(
        kernel,
        out_shape=jax.ShapeDtypeStruct((1, 1), jnp.float32),
        grid_spec=pltpu.PrefetchScalarGridSpec(
            num_scalar_prefetch=1,           # size_ids -> SMEM
            grid=grid,
            in_specs=[
                pl.BlockSpec((block_rows, 128), lambda i, ids: (i, 0)),  # tokens
                pl.BlockSpec((block_rows, 128), lambda i, ids: (i, 0)),  # attention
            ],
            out_specs=pl.BlockSpec((1, 1), lambda i, ids: (0, 0)),
            scratch_shapes=[pltpu.VMEM((1, 1), jnp.float32)] * 3,
        ),
        compiler_params=pltpu.CompilerParams(
            dimension_semantics=("arbitrary",)),     # sequence axis is a reduction
    )(size_ids, tok2d, attn2d)
    return out[0, 0]


size_loss_pallas = jax.jit(_size_loss_pallas)


class SizeLossJax:
    """JAX/Pallas port of the PyTorch SizeLoss module."""

    def __init__(self, idx2word):
        # The PyTorch module names this `word2idx` but indexes it with token
        # ids, i.e. it is really an idx -> word mapping.
        self.idx2word = idx2word
        self.size_related_words = {"elephant", "car", "too"}
        # Resolve the string lookup ONCE: token ids whose word is size-related.
        ids = sorted(i for i, w in idx2word.items()
                     if w in self.size_related_words)
        if not ids:
            ids = [-2]           # sentinel id that matches nothing -> loss is 0.0
        self.size_ids = jnp.asarray(ids, dtype=jnp.int32)

    def __call__(self, attention, src_tokens):
        tokens = jnp.asarray(src_tokens, dtype=jnp.int32)[0]
        return size_loss_pallas(attention, tokens, self.size_ids)


if __name__ == "__main__":
    # Small deterministic example: seq length 8.
    S = 8
    vocab = ["the", "elephant", "is", "too", "big", "for", "car", "ride"]
    idx2word = {i: w for i, w in enumerate(vocab)}

    key = jax.random.PRNGKey(0)
    # Per-position attention weights (softmax-normalized for realism).
    attention = jax.nn.softmax(jax.random.normal(key, (S,), dtype=jnp.float32))
    # One sentence using every vocab word once: positions 1, 3, 6 are size-related.
    src_tokens = jnp.arange(S, dtype=jnp.int32).reshape(1, S)

    loss_fn = SizeLossJax(idx2word)
    loss = loss_fn(attention, src_tokens)
    loss = jax.block_until_ready(loss)

    # Plain-JAX reference mirroring the PyTorch loop.
    size_idx = jnp.array([1, 3, 6])
    other_idx = jnp.array([0, 2, 4, 5, 7])
    ref = jnp.mean(1.0 - attention[size_idx]) + jnp.mean(attention[other_idx])
    # Exact division in the kernel -> tight tolerance.
    assert abs(float(loss) - float(ref)) < 1e-5, (float(loss), float(ref))

    print("KERNEL_OK")
</pallas_src>

<mosaic_0001>
module attributes {stable_mosaic.version = 11 : i64} {
  func.func @size_loss_kernel(%arg0: i32, %arg1: memref<3xi32, #tpu.memory_space<smem>>, %arg2: memref<8x128xi32, #tpu.memory_space<vmem>>, %arg3: memref<8x128xf32, #tpu.memory_space<vmem>>, %arg4: memref<1x1xf32, #tpu.memory_space<vmem>>, %arg5: memref<1x1xf32, #tpu.memory_space<vmem>>, %arg6: memref<1x1xf32, #tpu.memory_space<vmem>>, %arg7: memref<1x1xf32, #tpu.memory_space<vmem>>) attributes {dimension_semantics = [#tpu.dimension_semantics<arbitrary>], iteration_bounds = array<i64: 1>, scalar_prefetch = 1 : i64, scratch_operands = 3 : i64, tpu.core_type = #tpu.core_type<tc>, window_params = [{transform_indices = @transform_0, window_bounds = array<i64: 8, 128>}, {transform_indices = @transform_1, window_bounds = array<i64: 8, 128>}, {pipeline_mode = #tpu.pipeline_mode<synchronous>, transform_indices = @transform_2, window_bounds = array<i64: 1, 1>}]} {
    %c0_i32 = arith.constant 0 : i32
    %0 = arith.cmpi eq, %arg0, %c0_i32 : i32
    %1 = arith.extui %0 : i1 to i32
    %c0_i32_0 = arith.constant 0 : i32
    %2 = arith.cmpi ne, %1, %c0_i32_0 : i32
    scf.if %2 {
      %cst_23 = arith.constant 0.000000e+00 : f32
      %59 = vector.broadcast %cst_23 : f32 to vector<1x1xf32>
      %c0_24 = arith.constant 0 : index
      %c0_25 = arith.constant 0 : index
      %60 = vector.load %arg5[%c0_24, %c0_25] : memref<1x1xf32, #tpu.memory_space<vmem>>, vector<1x1xf32>
      tpu.vector_store %arg5[%c0_24, %c0_25], %59 {strides = array<i32>} : memref<1x1xf32, #tpu.memory_space<vmem>>, vector<1x1xf32>,
      %cst_26 = arith.constant 0.000000e+00 : f32
      %61 = vector.broadcast %cst_26 : f32 to vector<1x1xf32>
      %c0_27 = arith.constant 0 : index
      %c0_28 = arith.constant 0 : index
      %62 = vector.load %arg6[%c0_27, %c0_28] : memref<1x1xf32, #tpu.memory_space<vmem>>, vector<1x1xf32>
      tpu.vector_store %arg6[%c0_27, %c0_28], %61 {strides = array<i32>} : memref<1x1xf32, #tpu.memory_space<vmem>>, vector<1x1xf32>,
      %cst_29 = arith.constant 0.000000e+00 : f32
      %63 = vector.broadcast %cst_29 : f32 to vector<1x1xf32>
      %c0_30 = arith.constant 0 : index
      %c0_31 = arith.constant 0 : index
      %64 = vector.load %arg7[%c0_30, %c0_31] : memref<1x1xf32, #tpu.memory_space<vmem>>, vector<1x1xf32>
      tpu.vector_store %arg7[%c0_30, %c0_31], %63 {strides = array<i32>} : memref<1x1xf32, #tpu.memory_space<vmem>>, vector<1x1xf32>,
    } else {
    }
    %c0 = arith.constant 0 : index
    %c0_1 = arith.constant 0 : index
    %3 = vector.load %arg2[%c0, %c0_1] : memref<8x128xi32, #tpu.memory_space<vmem>>, vector<8x128xi32>
    %c0_2 = arith.constant 0 : index
    %c0_3 = arith.constant 0 : index
    %4 = vector.load %arg3[%c0_2, %c0_3] : memref<8x128xf32, #tpu.memory_space<vmem>>, vector<8x128xf32>
    %5 = tpu.iota {dimensions = array<i32: 0>} : vector<8x128xi32>
    %6 = tpu.iota {dimensions = array<i32: 1>} : vector<8x128xi32>
    %c8_i32 = arith.constant 8 : i32
    %7 = arith.muli %arg0, %c8_i32 : i32
    %8 = vector.broadcast %7 : i32 to vector<8x128xi32>
    %9 = arith.addi %8, %5 : vector<8x128xi32>
    %c128_i32 = arith.constant 128 : i32
    %10 = vector.broadcast %c128_i32 : i32 to vector<8x128xi32>
    %11 = arith.muli %9, %10 : vector<8x128xi32>
    %12 = arith.addi %11, %6 : vector<8x128xi32>
    %c8_i32_4 = arith.constant 8 : i32
    %13 = vector.broadcast %c8_i32_4 : i32 to vector<8x128xi32>
    %14 = arith.cmpi slt, %12, %13 : vector<8x128xi32>
    %c0_5 = arith.constant 0 : index
    %15 = memref.load %arg1[%c0_5] : memref<3xi32, #tpu.memory_space<smem>>
    %16 = vector.broadcast %15 : i32 to vector<8x128xi32>
    %17 = arith.cmpi eq, %3, %16 : vector<8x128xi32>
    %c1 = arith.constant 1 : index
    %18 = memref.load %arg1[%c1] : memref<3xi32, #tpu.memory_space<smem>>
    %19 = vector.broadcast %18 : i32 to vector<8x128xi32>
    %20 = arith.cmpi eq, %3, %19 : vector<8x128xi32>
    %21 = arith.ori %17, %20 : vector<8x128xi1>
    %c2 = arith.constant 2 : index
    %22 = memref.load %arg1[%c2] : memref<3xi32, #tpu.memory_space<smem>>
    %23 = vector.broadcast %22 : i32 to vector<8x128xi32>
    %24 = arith.cmpi eq, %3, %23 : vector<8x128xi32>
    %25 = arith.ori %21, %24 : vector<8x128xi1>
    %26 = arith.andi %25, %14 : vector<8x128xi1>
    %27 = arith.extui %26 : vector<8x128xi1> to vector<8x128xi32>
    %28 = arith.sitofp %27 : vector<8x128xi32> to vector<8x128xf32>
    %cst = arith.constant 0.000000e+00 : f32
    %29 = vector.broadcast %cst : f32 to vector<8x128xf32>
    %30 = arith.select %14, %4, %29 : vector<8x128xi1>, vector<8x128xf32>
    %c0_6 = arith.constant 0 : index
    %c0_7 = arith.constant 0 : index
    %31 = vector.load %arg5[%c0_6, %c0_7] : memref<1x1xf32, #tpu.memory_space<vmem>>, vector<1x1xf32>
    %32 = vector.shape_cast %28 : vector<8x128xf32> to vector<1x8x128xf32>
    %cst_8 = arith.constant dense<0.000000e+00> : vector<1xf32>
    %33 = vector.multi_reduction <add>, %32, %cst_8 [1, 2] : vector<1x8x128xf32> to vector<1xf32>
    %34 = vector.shape_cast %33 : vector<1xf32> to vector<1x1x1xf32>
    %35 = vector.extract %34[0, 0, 0] : f32 from vector<1x1x1xf32>
    %36 = vector.broadcast %35 : f32 to vector<1x1xf32>
    %37 = arith.addf %31, %36 : vector<1x1xf32>
    %c0_9 = arith.constant 0 : index
    %c0_10 = arith.constant 0 : index
    %38 = vector.load %arg5[%c0_9, %c0_10] : memref<1x1xf32, #tpu.memory_space<vmem>>, vector<1x1xf32>
    tpu.vector_store %arg5[%c0_9, %c0_10], %37 {strides = array<i32>} : memref<1x1xf32, #tpu.memory_space<vmem>>, vector<1x1xf32>,
    %c0_11 = arith.constant 0 : index
    %c0_12 = arith.constant 0 : index
    %39 = vector.load %arg6[%c0_11, %c0_12] : memref<1x1xf32, #tpu.memory_space<vmem>>, vector<1x1xf32>
    %40 = vector.shape_cast %30 : vector<8x128xf32> to vector<1x8x128xf32>
    %cst_13 = arith.constant dense<0.000000e+00> : vector<1xf32>
    %41 = vector.multi_reduction <add>, %40, %cst_13 [1, 2] : vector<1x8x128xf32> to vector<1xf32>
    %42 = vector.shape_cast %41 : vector<1xf32> to vector<1x1x1xf32>
    %43 = vector.extract %42[0, 0, 0] : f32 from vector<1x1x1xf32>
    %44 = vector.broadcast %43 : f32 to vector<1x1xf32>
    %45 = arith.addf %39, %44 : vector<1x1xf32>
    %c0_14 = arith.constant 0 : index
    %c0_15 = arith.constant 0 : index
    %46 = vector.load %arg6[%c0_14, %c0_15] : memref<1x1xf32, #tpu.memory_space<vmem>>, vector<1x1xf32>
    tpu.vector_store %arg6[%c0_14, %c0_15], %45 {strides = array<i32>} : memref<1x1xf32, #tpu.memory_space<vmem>>, vector<1x1xf32>,
    %c0_16 = arith.constant 0 : index
    %c0_17 = arith.constant 0 : index
    %47 = vector.load %arg7[%c0_16, %c0_17] : memref<1x1xf32, #tpu.memory_space<vmem>>, vector<1x1xf32>
    %48 = arith.mulf %28, %30 : vector<8x128xf32>
    %49 = vector.shape_cast %48 : vector<8x128xf32> to vector<1x8x128xf32>
    %cst_18 = arith.constant dense<0.000000e+00> : vector<1xf32>
    %50 = vector.multi_reduction <add>, %49, %cst_18 [1, 2] : vector<1x8x128xf32> to vector<1xf32>
    %51 = vector.shape_cast %50 : vector<1xf32> to vector<1x1x1xf32>
    %52 = vector.extract %51[0, 0, 0] : f32 from vector<1x1x1xf32>
    %53 = vector.broadcast %52 : f32 to vector<1x1xf32>
    %54 = arith.addf %47, %53 : vector<1x1xf32>
    %c0_19 = arith.constant 0 : index
    %c0_20 = arith.constant 0 : index
    %55 = vector.load %arg7[%c0_19, %c0_20] : memref<1x1xf32, #tpu.memory_space<vmem>>, vector<1x1xf32>
    tpu.vector_store %arg7[%c0_19, %c0_20], %54 {strides = array<i32>} : memref<1x1xf32, #tpu.memory_space<vmem>>, vector<1x1xf32>,
    %c0_i32_21 = arith.constant 0 : i32
    %56 = arith.cmpi eq, %arg0, %c0_i32_21 : i32
    %57 = arith.extui %56 : i1 to i32
    %c0_i32_22 = arith.constant 0 : i32
    %58 = arith.cmpi ne, %57, %c0_i32_22 : i32
    scf.if %58 {
      %c0_23 = arith.constant 0 : index
      %c0_24 = arith.constant 0 : index
      %59 = vector.load %arg5[%c0_23, %c0_24] : memref<1x1xf32, #tpu.memory_space<vmem>>, vector<1x1xf32>
      %c0_25 = arith.constant 0 : index
      %c0_26 = arith.constant 0 : index
      %60 = vector.load %arg6[%c0_25, %c0_26] : memref<1x1xf32, #tpu.memory_space<vmem>>, vector<1x1xf32>
      %c0_27 = arith.constant 0 : index
      %c0_28 = arith.constant 0 : index
      %61 = vector.load %arg7[%c0_27, %c0_28] : memref<1x1xf32, #tpu.memory_space<vmem>>, vector<1x1xf32>
      %cst_29 = arith.constant 8.000000e+00 : f32
      %62 = vector.broadcast %cst_29 : f32 to vector<1x1xf32>
      %63 = arith.subf %62, %59 : vector<1x1xf32>
      %cst_30 = arith.constant 1.000000e+00 : f32
      %64 = vector.broadcast %cst_30 : f32 to vector<1x1xf32>
      %65 = arith.maximumf %59, %64 : vector<1x1xf32>
      %66 = arith.divf %61, %65 : vector<1x1xf32>
      %cst_31 = arith.constant 1.000000e+00 : f32
      %67 = vector.broadcast %cst_31 : f32 to vector<1x1xf32>
      %68 = arith.subf %67, %66 : vector<1x1xf32>
      %69 = arith.subf %60, %61 : vector<1x1xf32>
      %cst_32 = arith.constant 1.000000e+00 : f32
      %70 = vector.broadcast %cst_32 : f32 to vector<1x1xf32>
      %71 = arith.maximumf %63, %70 : vector<1x1xf32>
      %72 = arith.divf %69, %71 : vector<1x1xf32>
      %cst_33 = arith.constant 0.000000e+00 : f32
      %73 = vector.broadcast %cst_33 : f32 to vector<1x1xf32>
      %74 = arith.cmpf ogt, %59, %73 : vector<1x1xf32>
      %75 = arith.addf %68, %72 : vector<1x1xf32>
      %cst_34 = arith.constant 0.000000e+00 : f32
      %76 = vector.broadcast %cst_34 : f32 to vector<1x1xf32>
      %77 = arith.select %74, %75, %76 : vector<1x1xi1>, vector<1x1xf32>
      %c0_35 = arith.constant 0 : index
      %c0_36 = arith.constant 0 : index
      %78 = vector.load %arg4[%c0_35, %c0_36] : memref<1x1xf32, #tpu.memory_space<vmem>>, vector<1x1xf32>
      tpu.vector_store %arg4[%c0_35, %c0_36], %77 {strides = array<i32>} : memref<1x1xf32, #tpu.memory_space<vmem>>, vector<1x1xf32>,
    } else {
    }
    return
  }
  func.func @transform_0(%arg0: i32, %arg1: memref<3xi32, #tpu.memory_space<smem>>) -> (i32, i32) {
    %c0_i32 = arith.constant 0 : i32
    %c0_i32_0 = arith.constant 0 : i32
    return %arg0, %c0_i32 : i32, i32
  }
  func.func @transform_1(%arg0: i32, %arg1: memref<3xi32, #tpu.memory_space<smem>>) -> (i32, i32) {
    %c0_i32 = arith.constant 0 : i32
    %c0_i32_0 = arith.constant 0 : i32
    return %arg0, %c0_i32 : i32, i32
  }
  func.func @transform_2(%arg0: i32, %arg1: memref<3xi32, #tpu.memory_space<smem>>) -> (i32, i32) {
    %c0_i32 = arith.constant 0 : i32
    %c0_i32_0 = arith.constant 0 : i32
    %c0_i32_1 = arith.constant 0 : i32
    return %c0_i32, %c0_i32_0 : i32, i32
  }
}

</mosaic_0001>

<bundles_post_ra>
// kernel: _size_loss_pallas.1
= control target key start
LH: loop header
LB: loop body
LE: loop exit
PB: predicated region body
PF: predicated region fallthrough
CT: control target
= control target key end

     0   :  { %s233_s0 = inlined_call_operand.vmem [shape: s32[3], index: 0, kind: input, shape index: {}]   ;;  %s234_s1 = inlined_call_operand.vmem [shape: s32[8,128], index: 1, kind: input, shape index: {}]   ;;  %s235_s2 = inlined_call_operand.vmem [shape: f32[8,128], index: 2, kind: input, shape index: {}]   ;;  %s236_s3 = inlined_call_operand.hbm [shape: f32[1,1], index: 3, kind: output, shape index: {}]  }
   0x1   :  { %s8_s14 = sshll.u32 %s233_s0, 4  ;;  %s9_s14 = int_to_ptr.vmem [resolvable:$true] %s8_s14 }
   0x2   :  { %s144_s15 = scalar_lea.vmem %s9_s14, 16  ;;  %p149_p1 = scmp.lt.s32.totalorder %s9_s14, %s9_s14 }
   0x3   :  { %p145_p0 = scmp.ne.s32.totalorder %s9_s14, %s144_s15  ;;  %p150_p2 = scmp.lt.s32.totalorder %s144_s15, %s144_s15 }
   0x5   :  { %p151_p3 = por %p150_p2, %p149_p1 }
   0x7   :  { %p152_p4 = pnand %p151_p3, %p145_p0 }
   0x9   :  { %155 = shalt.err (!%p152_p4)  }
   0xa   :  { %s182_s16 = smov [#allocation6]  }
   0xb   :  { %11 = dma.vmem_to_smem %s9_s14, 16, %s182_s16, [#allocation5] }
   0xc   :  { %178 = dma.done.wait [#allocation5], 16 }
   0xd   :  { %179 = vsyncadd [#allocation5], 4294967280 }
   0xe   :  { %13 = sfence }
   0xf   :  { %v29_v0 = vlaneseq  ;;  %s39_s17 = sld [smem:[#allocation6]]  ;;  %s128_s18 = sld [smem:[#allocation6 + $0x1]]  ;;  %vm23_vm0 = vcmask 0  }
  0x10   :  { %s129_s19 = sld [smem:[#allocation6 + $0x2]] }
  0x11   :  { %14 = vsyncpa [#allocation8], 0  ;;  %v30_v1 = vshrl.u32 %v29_v0, 7  ;;  %v32_v2 = vand.u32 127, %v29_v0  ;;  %v183_v3 = vmov 0.0   ;;  %v27_v4 = vld [vmem:[%s234_s1] sm:$0xff] }
  0x12   :  { %24 = vst.msk [vmem:[#allocation2] sm:$0x1] %vm23_vm0, %v183_v3  ;;  %25 = vst.msk [vmem:[#allocation3] sm:$0x1] %vm23_vm0, %v183_v3  ;;  %v28_v9 = vld [vmem:[%s235_s2] sm:$0xff]  ;;  %s184_s24 = smov [#allocation7]  }
  0x13   :  { %26 = vst.msk [vmem:[#allocation4] sm:$0x1] %vm23_vm0, %v183_v3  ;;  %v36_v5 = vmul.u32 128, %v30_v1  ;;  %s120_s25 = sshll.u32 %s184_s24, 4  ;;  %s121_s25 = int_to_ptr.vmem [resolvable:$true] %s120_s25 }
  0x14   :  { %s156_s26 = scalar_lea.vmem %s121_s25, 16  ;;  %s160_s27 = scalar_lea.vmem %s121_s25, 32 }
  0x15   :  { %v37_v6 = vadd.s32 %v36_v5, %v32_v2  ;;  %v40_v7 = vstv %s39_s17  ;;  %v43_v8 = vstv %s128_s18  ;;  %p157_p5 = scmp.ne.s32.totalorder %s121_s25, %s156_s26  ;;  %p161_p6 = scmp.lt.s32.totalorder %s121_s25, %s121_s25 }
  0x16   :  { %vm41_vm1 = vcmp.eq.s32.totalorder %v27_v4, %v40_v7  ;;  %vm44_vm2 = vcmp.eq.s32.totalorder %v27_v4, %v43_v8  ;;  %v47_v10 = vstv %s129_s19  ;;  %p162_p7 = scmp.lt.s32.totalorder %s160_s27, %s156_s26 }
  0x17   :  { %vm38_vm3 = vcmp.lt.s32.totalorder %v37_v6, 8  ;;  %vm45_vm4 = vmor %vm41_vm1, %vm44_vm2  ;;  %vm48_vm5 = vcmp.eq.s32.totalorder %v27_v4, %v47_v10 }
  0x18   :  { %vm49_vm6 = vmor %vm45_vm4, %vm48_vm5  ;;  %v53_v11 = vsel %vm38_vm3, %v28_v9, 0.0  ;;  %p163_p8 = por %p162_p7, %p161_p6 }
  0x19   :  { %vm50_vm7 = vmand %vm49_vm6, %vm38_vm3  ;;  %v54_v35 = vld [vmem:[#allocation2] sm:$0x1]  ;;  %v68_v38 = vld [vmem:[#allocation3] sm:$0x1] }
  0x1a   :  { %v130_v12 = vsel %vm50_vm7, 1.0, %v183_v3  ;;  %v81_v39 = vld [vmem:[#allocation4] sm:$0x1]  ;;  %p164_p9 = pnand %p163_p8, %p157_p5 }
  0x1b   :  { %55 = vadd.xlane.f32.xlu0 %v130_v12  ;;  %v82_v13 = vmul.f32 %v130_v12, %v53_v11 }
  0x1d   :  { %83 = vadd.xlane.f32.xlu1 %v82_v13 }
  0x1f   :  { %69 = vadd.xlane.f32.xlu0 %v53_v11 }
  0xa8   :  { %v56_v14 = vpop.xlane.xlu0 %55 }
  0xa9   :  { %v57_v15 = vrot.slane %v56_v14, 4 }
  0xaa   :  { %v84_v16 = vpop.xlane.xlu1 %83 }
  0xab   :  { %v58_v17 = vadd.f32 %v57_v15, %v56_v14  ;;  %v85_v18 = vrot.slane %v84_v16, 4 }
  0xac   :  { %v70_v19 = vpop.xlane.xlu0 %69 }
  0xad   :  { %v59_v20 = vrot.slane %v58_v17, 2  ;;  %v71_v21 = vrot.slane %v70_v19, 4  ;;  %v86_v22 = vadd.f32 %v85_v18, %v84_v16 }
  0xaf   :  { %v72_v23 = vadd.f32 %v71_v21, %v70_v19  ;;  %v87_v24 = vrot.slane %v86_v22, 2  ;;  %v60_v25 = vadd.f32 %v59_v20, %v58_v17 }
  0xb1   :  { %v73_v26 = vrot.slane %v72_v23, 2  ;;  %v88_v27 = vadd.f32 %v87_v24, %v86_v22  ;;  %v61_v28 = vrot.slane %v60_v25, 1 }
  0xb3   :  { %v74_v29 = vadd.f32 %v73_v26, %v72_v23  ;;  %v62_v30 = vadd.f32 %v61_v28, %v60_v25  ;;  %v89_v31 = vrot.slane %v88_v27, 1 }
  0xb5   :  { %131 = vpush %v62_v30  ;;  %v75_v32 = vrot.slane %v74_v29, 1  ;;  %v90_v33 = vadd.f32 %v89_v31, %v88_v27 }
  0xb7   :  { %v76_v34 = vadd.f32 %v75_v32, %v74_v29 }
  0xb9   :  { %133 = vpush %v76_v34 }
  0xba   :  { %135 = vpush %v90_v33 }
  0xe6   :  { %s132_s1 = spop %131 }
  0xe7   :  { %v64_v36 = vstv %s132_s1 }
  0xe8   :  { %v65_v37 = vadd.f32 %v64_v36, %v54_v35 }
  0xea   :  { %67 = vst.msk [vmem:[#allocation2] sm:$0x1] %vm23_vm0, %v65_v37  ;;  %s134_s2 = spop %133 }
  0xeb   :  { %v78_v40 = vstv %s134_s2  ;;  %s136_s23 = spop %135 }
  0xec   :  { %v79_v41 = vadd.f32 %v78_v40, %v68_v38  ;;  %v92_v42 = vstv %s136_s23 }
  0xed   :  { %v93_v43 = vadd.f32 %v92_v42, %v81_v39 }
  0xee   :  { %80 = vst.msk [vmem:[#allocation3] sm:$0x1] %vm23_vm0, %v79_v41 }
  0xef   :  { %94 = vst.msk [vmem:[#allocation4] sm:$0x1] %vm23_vm0, %v93_v43 }
  0xf1   :  { %v98_v44 = vld [vmem:[#allocation2] sm:$0x1] }
  0xf2   :  { %v101_v45 = vsub.f32 8.0, %v98_v44  ;;  %v102_v46 = vmax.f32 %v98_v44, 1.0  ;;  %vm110_vm8 = vcmp.gt.f32.partialorder %v98_v44, 0.0 }
  0xf4   :  { %140 = vrcp.f32 %v102_v46  ;;  %v107_v47 = vmax.f32 %v101_v45, 1.0 }
  0xf5   :  { %v99_v48 = vld [vmem:[#allocation3] sm:$0x1] }
  0xf6   :  { %142 = vrcp.f32 %v107_v47  ;;  %v100_v49 = vld [vmem:[#allocation4] sm:$0x1] }
  0xf7   :  { %v106_v52 = vsub.f32 %v99_v48, %v100_v49 }
  0xfe   :  { %v141_v50 = vpop.eup %140 }
  0xff   :  { %v104_v51 = vmul.f32 %v141_v50, %v100_v49 }
 0x100   :  { %v143_v53 = vpop.eup %142 }
 0x101   :  { %v105_v54 = vsub.f32 1.0, %v104_v51  ;;  %v109_v55 = vmul.f32 %v143_v53, %v106_v52 }
 0x103   :  { %v111_v56 = vadd.f32 %v109_v55, %v105_v54 }
 0x105   :  { %v112_v57 = vsel %vm110_vm8, %v111_v56, 0.0 }
 0x106   :  { %113 = vst.msk [vmem:[#allocation7] sm:$0x1] %vm23_vm0, %v112_v57 }
 0x107   :  { %167 = shalt.err (!%p164_p9)
}
 0x108   :  { %s168_s30 = scalar_lea.hbm %s236_s3, 16 }
 0x109   :  { %p169_p10 = scmp.ne.s32.totalorder %s236_s3, %s168_s30  ;;  %p172_p11 = scmp.lt.u32.totalorder %s168_s30, %s236_s3 }
 0x10b   :  { %p174_p12 = pnand %p172_p11, %p169_p10 }
 0x10d   :  { %177 = shalt.err (!%p174_p12)
}
 0x10e   :  { %123 = dma.vmem_to_hbm [thread:$0]  %s121_s25, 16, %s236_s3, [#allocation8]  }
 0x10f   :  { %180 = dma.done.wait [#allocation8], 16  }
 0x110   :  { %181 = vsyncadd [#allocation8], 4294967280 }
 0x111   :  { %127 = vsyncpa [#allocation8], 1 }

</bundles_post_ra>
